<compile_context>
chip_gen: v7x
topology: tpu7x:2x2x1
jax: 0.10.0
libtpu: 0.0.40
codegen_flags: <defaults>
</compile_context>

<pallas_src>
import jax
import jax.numpy as jnp
from jax.experimental import pallas as pl
from jax.experimental.pallas import tpu as pltpu

OUT_LANES = 128  # lane-dense fused output width (policy logits + value)


# --------------------------------------------------------------------------- #
# Kernel
# --------------------------------------------------------------------------- #
def _ac_kernel(x_ref,
               ew_ref, eb_ref,          # extractor Linear
               w1_ref,                  # fused [policy_fc1 | value_fc1]  (in, 256)
               pw2_ref, vw2_ref,        # un-split fc2 weights            (256, 256)
               wo_ref,                  # packed final weights            (1024, 128)
               bias_ref,                # [b1(256) | pb2(256) | vb2(256) | bo(128)]
               out_ref):
    f32 = jnp.float32
    bf16 = jnp.bfloat16

    # lane-aligned static slices of the packed bias vector (free)
    b1 = bias_ref[:, 0:256]
    pb2 = bias_ref[:, 256:512]
    vb2 = bias_ref[:, 512:768]
    bo = bias_ref[:, 768:896]

    x = x_ref[...]                                                  # bf16 (B, obs)

    # extractor: Linear + ReLU (latent shared by both heads)
    latent = jnp.maximum(
        jnp.dot(x, ew_ref[...], preferred_element_type=f32) + eb_ref[...], 0.0
    ).astype(bf16)                                                  # (B, in_size)

    # fused fc1 for both heads: one MXU pass, split at lane 128 (aligned, free)
    t1 = jnp.dot(latent, w1_ref[...], preferred_element_type=f32) + b1
    tp1 = t1[:, :128]                                               # policy branch
    tv1 = t1[:, 128:]                                               # value branch

    # ---- policy branch (consumed fully before value branch -> short live ranges)
    # CReLU: concat at a 128-lane boundary = vreg-tile juxtaposition, no relayout.
    hp = jnp.concatenate(
        [jnp.maximum(tp1, 0.0), jnp.maximum(-tp1, 0.0)], axis=-1).astype(bf16)
    tp2 = jnp.dot(hp, pw2_ref[...], preferred_element_type=f32) + pb2   # (B, 256)
    gp = jnp.concatenate(
        [jnp.maximum(tp2, 0.0), jnp.maximum(-tp2, 0.0)], axis=-1).astype(bf16)

    # ---- value branch
    hv = jnp.concatenate(
        [jnp.maximum(tv1, 0.0), jnp.maximum(-tv1, 0.0)], axis=-1).astype(bf16)
    tv2 = jnp.dot(hv, vw2_ref[...], preferred_element_type=f32) + vb2   # (B, 256)
    gv = jnp.concatenate(
        [jnp.maximum(tv2, 0.0), jnp.maximum(-tv2, 0.0)], axis=-1).astype(bf16)

    # ---- single K=1024 fused final projection into one (B, 128) accumulator:
    #      lanes [0:A) = policy logits, lane A = value
    g = jnp.concatenate([gp, gv], axis=-1)                              # (B, 1024)
    out = jnp.dot(g, wo_ref[...], preferred_element_type=f32) + bo      # (B, 128) f32
    out_ref[...] = out.astype(out_ref.dtype)                            # bf16 store


# --------------------------------------------------------------------------- #
# Host-side weight preprocessing (do ONCE, reuse across calls)
# --------------------------------------------------------------------------- #
def prepare_params(p):
    """Fuse / pack / bf16-cast the PyTorch-layout params for the kernel."""
    bf16, f32 = jnp.bfloat16, jnp.float32
    A = p["policy_fc_w"].shape[1]
    assert A <= OUT_LANES - 1, "action_size must fit in the 128-lane fused output"

    kp = {}
    kp["ew"] = p["ext_w"].astype(bf16)
    kp["eb"] = p["ext_b"].astype(f32).reshape(1, -1)

    # fused fc1: [policy_fc1 | value_fc1] along the output dim -> (in_size, 256)
    kp["w1"] = jnp.concatenate(
        [p["policy_fc1_w"], p["value_fc1_w"]], axis=1).astype(bf16)

    # fc2 weights kept un-split (kernel builds the 256-wide CReLU operand itself)
    kp["pw2"] = p["policy_fc2_w"].astype(bf16)
    kp["vw2"] = p["value_fc2_w"].astype(bf16)

    # packed final projection: rows [0:512) <- policy CReLU, [512:1024) <- value CReLU
    #   out[:, :A] = policy logits, out[:, A] = value
    wo = jnp.zeros((1024, OUT_LANES), f32)
    wo = wo.at[:512, :A].set(p["policy_fc_w"])
    wo = wo.at[512:, A].set(p["value_fc_w"][:, 0])
    kp["wo"] = wo.astype(bf16)

    # packed biases: [fc1(policy|value) | policy_fc2 | value_fc2 | final(128)]
    bias = jnp.zeros((1, 896), f32)
    bias = bias.at[:, 0:128].set(p["policy_fc1_b"].reshape(1, -1))
    bias = bias.at[:, 128:256].set(p["value_fc1_b"].reshape(1, -1))
    bias = bias.at[:, 256:512].set(p["policy_fc2_b"].reshape(1, -1))
    bias = bias.at[:, 512:768].set(p["value_fc2_b"].reshape(1, -1))
    bias = bias.at[:, 768:768 + A].set(p["policy_fc_b"].reshape(1, -1))
    bias = bias.at[:, 768 + A].set(p["value_fc_b"].reshape(-1)[0])
    kp["bias"] = bias
    return kp


# --------------------------------------------------------------------------- #
# Forward wrapper
# --------------------------------------------------------------------------- #
def _round_up(n, m):
    return ((n + m - 1) // m) * m


def actor_critic_forward(x, kp, *, action_size):
    """Returns (value[B], policy[B, action_size]) matching the PyTorch module."""
    B, obs_dim = x.shape
    xb = x.astype(jnp.bfloat16)

    # Batch tile: up to 512 rows (multiple of 256 for v6e/v7x MXU; >=2 grid steps
    # at large B so v7x's two TensorCores both get work). Weights (~0.5 MiB bf16)
    # + activations stay far below VMEM limits on all generations.
    if B <= 512:
        tile_b = _round_up(B, 16)          # bf16 sublane packing; single grid step
    else:
        tile_b = 512
    Bp = _round_up(B, tile_b)
    if Bp != B:
        xb = jnp.pad(xb, ((0, Bp - B), (0, 0)))   # only when actually needed

    args = (xb, kp["ew"], kp["eb"], kp["w1"], kp["pw2"], kp["vw2"],
            kp["wo"], kp["bias"])

    def _const_spec(a):
        # full-array block, constant index -> stays VMEM-resident across grid steps
        return pl.BlockSpec(a.shape, lambda i, _nd=a.ndim: (0,) * _nd)

    in_specs = [pl.BlockSpec((tile_b, obs_dim), lambda i: (i, 0))]
    in_specs += [_const_spec(a) for a in args[1:]]

    out = pl.pallas_call(
        _ac_kernel,
        grid=(Bp // tile_b,),
        in_specs=in_specs,
        out_specs=pl.BlockSpec((tile_b, OUT_LANES), lambda i: (i, 0)),
        out_shape=jax.ShapeDtypeStruct((Bp, OUT_LANES), jnp.bfloat16),
        compiler_params=pltpu.CompilerParams(dimension_semantics=("parallel",)),
    )(*args)

    policy = out[:B, :action_size].astype(jnp.float32)
    value = out[:B, action_size].astype(jnp.float32)
    return value, policy


# --------------------------------------------------------------------------- #
# Synthetic parameters + pure-JAX reference
# --------------------------------------------------------------------------- #
def _init_params(key, obs_dim, in_size, action_size):
    """Deterministic synthetic parameters (weights stored as [in, out], f32)."""
    ks = jax.random.split(key, 16)

    def lin(kw, kb, fan_in, fan_out, scale=None):
        s = scale if scale is not None else (1.0 / jnp.sqrt(fan_in))
        w = jax.random.normal(kw, (fan_in, fan_out), jnp.float32) * s
        b = jax.random.normal(kb, (1, fan_out), jnp.float32) * 0.01
        return w, b

    p = {}
    # TODO(synk): the PyTorch `extractor` is an arbitrary nn.Module; synthesized
    # here as a single Linear(obs_dim -> in_size) + ReLU.
    p["ext_w"], p["ext_b"] = lin(ks[0], ks[1], obs_dim, in_size)
    p["value_fc1_w"], p["value_fc1_b"] = lin(ks[2], ks[3], in_size, 128)
    p["value_fc2_w"], p["value_fc2_b"] = lin(ks[4], ks[5], 256, 256)
    p["policy_fc1_w"], p["policy_fc1_b"] = lin(ks[6], ks[7], in_size, 128)
    p["policy_fc2_w"], p["policy_fc2_b"] = lin(ks[8], ks[9], 256, 256)
    p["value_fc_w"], p["value_fc_b"] = lin(ks[10], ks[11], 512, 1)
    # policy_fc uses xavier_normal_(gain=0.01) in the PyTorch module
    xav = 0.01 * jnp.sqrt(2.0 / (512 + action_size))
    p["policy_fc_w"], p["policy_fc_b"] = lin(ks[12], ks[13], 512, action_size,
                                             scale=xav)
    return p


def _reference_forward(x, p):
    """Pure-JAX f32 reference mirroring the PyTorch forward exactly."""
    latent = jnp.maximum(x @ p["ext_w"] + p["ext_b"], 0.0)
    t = latent @ p["policy_fc1_w"] + p["policy_fc1_b"]
    h = jnp.maximum(jnp.concatenate([t, -t], axis=-1), 0.0)
    t = h @ p["policy_fc2_w"] + p["policy_fc2_b"]
    h = jnp.maximum(jnp.concatenate([t, -t], axis=-1), 0.0)
    policy = h @ p["policy_fc_w"] + p["policy_fc_b"]
    t = latent @ p["value_fc1_w"] + p["value_fc1_b"]
    h = jnp.maximum(jnp.concatenate([t, -t], axis=-1), 0.0)
    t = h @ p["value_fc2_w"] + p["value_fc2_b"]
    h = jnp.maximum(jnp.concatenate([t, -t], axis=-1), 0.0)
    value = h @ p["value_fc_w"] + p["value_fc_b"]
    return value.squeeze(axis=1), policy


if __name__ == "__main__":
    B, obs_dim, in_size, action_size = 8, 16, 32, 4

    key = jax.random.PRNGKey(0)
    kx, kparam = jax.random.split(key)
    x = jax.random.normal(kx, (B, obs_dim), jnp.float32)
    params = _init_params(kparam, obs_dim, in_size, action_size)

    # Host-side fuse/pack/cast — do once, reuse across calls.
    kparams = prepare_params(params)

    fwd = jax.jit(actor_critic_forward, static_argnames=("action_size",))
    value, policy = fwd(x, kparams, action_size=action_size)
    jax.block_until_ready((value, policy))

    v_ref, p_ref = _reference_forward(x, params)
    assert value.shape == (B,)
    assert policy.shape == (B, action_size)
    # Kernel uses bf16 weights/activations/output with f32 accumulation ->
    # looser tolerance vs the pure-f32 reference.
    assert jnp.allclose(value, v_ref, atol=3e-2, rtol=3e-2), (value, v_ref)
    assert jnp.allclose(policy, p_ref, atol=3e-2, rtol=3e-2), (policy, p_ref)

    print("KERNEL_OK")
</pallas_src>

<mosaic_0001>
module attributes {stable_mosaic.version = 11 : i64} {
  func.func @_ac_kernel(%arg0: i32, %arg1: memref<16x16xbf16, #tpu.memory_space<vmem>>, %arg2: memref<16x32xbf16, #tpu.memory_space<vmem>>, %arg3: memref<1x32xf32, #tpu.memory_space<vmem>>, %arg4: memref<32x256xbf16, #tpu.memory_space<vmem>>, %arg5: memref<256x256xbf16, #tpu.memory_space<vmem>>, %arg6: memref<256x256xbf16, #tpu.memory_space<vmem>>, %arg7: memref<1024x128xbf16, #tpu.memory_space<vmem>>, %arg8: memref<1x896xf32, #tpu.memory_space<vmem>>, %arg9: memref<16x128xbf16, #tpu.memory_space<vmem>>) attributes {dimension_semantics = [#tpu.dimension_semantics<parallel>], iteration_bounds = array<i64: 1>, scalar_prefetch = 0 : i64, scratch_operands = 0 : i64, tpu.core_type = #tpu.core_type<tc>, window_params = [{transform_indices = @transform_0, window_bounds = array<i64: 16, 16>}, {pipeline_mode = #tpu.pipeline_mode<synchronous>, transform_indices = @transform_1, window_bounds = array<i64: 16, 32>}, {pipeline_mode = #tpu.pipeline_mode<synchronous>, transform_indices = @transform_2, window_bounds = array<i64: 1, 32>}, {pipeline_mode = #tpu.pipeline_mode<synchronous>, transform_indices = @transform_3, window_bounds = array<i64: 32, 256>}, {pipeline_mode = #tpu.pipeline_mode<synchronous>, transform_indices = @transform_4, window_bounds = array<i64: 256, 256>}, {pipeline_mode = #tpu.pipeline_mode<synchronous>, transform_indices = @transform_5, window_bounds = array<i64: 256, 256>}, {pipeline_mode = #tpu.pipeline_mode<synchronous>, transform_indices = @transform_6, window_bounds = array<i64: 1024, 128>}, {pipeline_mode = #tpu.pipeline_mode<synchronous>, transform_indices = @transform_7, window_bounds = array<i64: 1, 896>}, {transform_indices = @transform_8, window_bounds = array<i64: 16, 128>}]} {
    %c0 = arith.constant 0 : index
    %c0_0 = arith.constant 0 : index
    %0 = vector.load %arg8[%c0, %c0_0] : memref<1x896xf32, #tpu.memory_space<vmem>>, vector<1x256xf32>
    %c0_1 = arith.constant 0 : index
    %c256 = arith.constant 256 : index
    %1 = vector.load %arg8[%c0_1, %c256] : memref<1x896xf32, #tpu.memory_space<vmem>>, vector<1x256xf32>
    %c0_2 = arith.constant 0 : index
    %c512 = arith.constant 512 : index
    %2 = vector.load %arg8[%c0_2, %c512] : memref<1x896xf32, #tpu.memory_space<vmem>>, vector<1x256xf32>
    %c0_3 = arith.constant 0 : index
    %c768 = arith.constant 768 : index
    %3 = vector.load %arg8[%c0_3, %c768] : memref<1x896xf32, #tpu.memory_space<vmem>>, vector<1x128xf32>
    %c0_4 = arith.constant 0 : index
    %c0_5 = arith.constant 0 : index
    %4 = vector.load %arg1[%c0_4, %c0_5] : memref<16x16xbf16, #tpu.memory_space<vmem>>, vector<16x16xbf16>
    %c0_6 = arith.constant 0 : index
    %c0_7 = arith.constant 0 : index
    %5 = vector.load %arg2[%c0_6, %c0_7] : memref<16x32xbf16, #tpu.memory_space<vmem>>, vector<16x32xbf16>
    %cst = arith.constant dense<0.000000e+00> : vector<16x32xf32>
    %6 = tpu.matmul %4, %5, %cst {dimension_numbers = #tpu.dot_dimension_numbers<[1], [0], [0], [1], [0, 0, 1, 1], [], []>} : vector<16x16xbf16>, vector<16x32xbf16>, vector<16x32xf32> -> vector<16x32xf32>
    %c0_8 = arith.constant 0 : index
    %c0_9 = arith.constant 0 : index
    %7 = vector.load %arg3[%c0_8, %c0_9] : memref<1x32xf32, #tpu.memory_space<vmem>>, vector<1x32xf32>
    %8 = vector.broadcast %7 : vector<1x32xf32> to vector<16x32xf32>
    %9 = arith.addf %6, %8 : vector<16x32xf32>
    %cst_10 = arith.constant 0.000000e+00 : f32
    %10 = vector.broadcast %cst_10 : f32 to vector<16x32xf32>
    %11 = arith.maximumf %9, %10 : vector<16x32xf32>
    %12 = arith.truncf %11 : vector<16x32xf32> to vector<16x32xbf16>
    %c0_11 = arith.constant 0 : index
    %c0_12 = arith.constant 0 : index
    %13 = vector.load %arg4[%c0_11, %c0_12] : memref<32x256xbf16, #tpu.memory_space<vmem>>, vector<32x256xbf16>
    %cst_13 = arith.constant dense<0.000000e+00> : vector<16x256xf32>
    %14 = tpu.matmul %12, %13, %cst_13 {dimension_numbers = #tpu.dot_dimension_numbers<[1], [0], [0], [1], [0, 0, 1, 1], [], []>} : vector<16x32xbf16>, vector<32x256xbf16>, vector<16x256xf32> -> vector<16x256xf32>
    %15 = vector.broadcast %0 : vector<1x256xf32> to vector<16x256xf32>
    %16 = arith.addf %14, %15 : vector<16x256xf32>
    %17 = vector.extract_strided_slice %16 {offsets = [0, 0], sizes = [16, 128], strides = [1, 1]} : vector<16x256xf32> to vector<16x128xf32>
    %18 = vector.extract_strided_slice %16 {offsets = [0, 128], sizes = [16, 128], strides = [1, 1]} : vector<16x256xf32> to vector<16x128xf32>
    %cst_14 = arith.constant 0.000000e+00 : f32
    %19 = vector.broadcast %cst_14 : f32 to vector<16x128xf32>
    %20 = arith.maximumf %17, %19 : vector<16x128xf32>
    %cst_15 = arith.constant 0.000000e+00 : f32
    %21 = vector.broadcast %cst_15 : f32 to vector<16x128xf32>
    %22 = arith.subf %21, %17 : vector<16x128xf32>
    %cst_16 = arith.constant 0.000000e+00 : f32
    %23 = vector.broadcast %cst_16 : f32 to vector<16x128xf32>
    %24 = arith.maximumf %22, %23 : vector<16x128xf32>
    %25 = tpu.concatenate %20, %24 in 1 : vector<16x128xf32>, vector<16x128xf32> -> vector<16x256xf32>
    %26 = arith.truncf %25 : vector<16x256xf32> to vector<16x256xbf16>
    %c0_17 = arith.constant 0 : index
    %c0_18 = arith.constant 0 : index
    %27 = vector.load %arg5[%c0_17, %c0_18] : memref<256x256xbf16, #tpu.memory_space<vmem>>, vector<256x256xbf16>
    %cst_19 = arith.constant dense<0.000000e+00> : vector<16x256xf32>
    %28 = tpu.matmul %26, %27, %cst_19 {dimension_numbers = #tpu.dot_dimension_numbers<[1], [0], [0], [1], [0, 0, 1, 1], [], []>} : vector<16x256xbf16>, vector<256x256xbf16>, vector<16x256xf32> -> vector<16x256xf32>
    %29 = vector.broadcast %1 : vector<1x256xf32> to vector<16x256xf32>
    %30 = arith.addf %28, %29 : vector<16x256xf32>
    %cst_20 = arith.constant 0.000000e+00 : f32
    %31 = vector.broadcast %cst_20 : f32 to vector<16x256xf32>
    %32 = arith.maximumf %30, %31 : vector<16x256xf32>
    %cst_21 = arith.constant 0.000000e+00 : f32
    %33 = vector.broadcast %cst_21 : f32 to vector<16x256xf32>
    %34 = arith.subf %33, %30 : vector<16x256xf32>
    %cst_22 = arith.constant 0.000000e+00 : f32
    %35 = vector.broadcast %cst_22 : f32 to vector<16x256xf32>
    %36 = arith.maximumf %34, %35 : vector<16x256xf32>
    %37 = tpu.concatenate %32, %36 in 1 : vector<16x256xf32>, vector<16x256xf32> -> vector<16x512xf32>
    %38 = arith.truncf %37 : vector<16x512xf32> to vector<16x512xbf16>
    %cst_23 = arith.constant 0.000000e+00 : f32
    %39 = vector.broadcast %cst_23 : f32 to vector<16x128xf32>
    %40 = arith.maximumf %18, %39 : vector<16x128xf32>
    %cst_24 = arith.constant 0.000000e+00 : f32
    %41 = vector.broadcast %cst_24 : f32 to vector<16x128xf32>
    %42 = arith.subf %41, %18 : vector<16x128xf32>
    %cst_25 = arith.constant 0.000000e+00 : f32
    %43 = vector.broadcast %cst_25 : f32 to vector<16x128xf32>
    %44 = arith.maximumf %42, %43 : vector<16x128xf32>
    %45 = tpu.concatenate %40, %44 in 1 : vector<16x128xf32>, vector<16x128xf32> -> vector<16x256xf32>
    %46 = arith.truncf %45 : vector<16x256xf32> to vector<16x256xbf16>
    %c0_26 = arith.constant 0 : index
    %c0_27 = arith.constant 0 : index
    %47 = vector.load %arg6[%c0_26, %c0_27] : memref<256x256xbf16, #tpu.memory_space<vmem>>, vector<256x256xbf16>
    %cst_28 = arith.constant dense<0.000000e+00> : vector<16x256xf32>
    %48 = tpu.matmul %46, %47, %cst_28 {dimension_numbers = #tpu.dot_dimension_numbers<[1], [0], [0], [1], [0, 0, 1, 1], [], []>} : vector<16x256xbf16>, vector<256x256xbf16>, vector<16x256xf32> -> vector<16x256xf32>
    %49 = vector.broadcast %2 : vector<1x256xf32> to vector<16x256xf32>
    %50 = arith.addf %48, %49 : vector<16x256xf32>
    %cst_29 = arith.constant 0.000000e+00 : f32
    %51 = vector.broadcast %cst_29 : f32 to vector<16x256xf32>
    %52 = arith.maximumf %50, %51 : vector<16x256xf32>
    %cst_30 = arith.constant 0.000000e+00 : f32
    %53 = vector.broadcast %cst_30 : f32 to vector<16x256xf32>
    %54 = arith.subf %53, %50 : vector<16x256xf32>
    %cst_31 = arith.constant 0.000000e+00 : f32
    %55 = vector.broadcast %cst_31 : f32 to vector<16x256xf32>
    %56 = arith.maximumf %54, %55 : vector<16x256xf32>
    %57 = tpu.concatenate %52, %56 in 1 : vector<16x256xf32>, vector<16x256xf32> -> vector<16x512xf32>
    %58 = arith.truncf %57 : vector<16x512xf32> to vector<16x512xbf16>
    %59 = tpu.concatenate %38, %58 in 1 : vector<16x512xbf16>, vector<16x512xbf16> -> vector<16x1024xbf16>
    %c0_32 = arith.constant 0 : index
    %c0_33 = arith.constant 0 : index
    %60 = vector.load %arg7[%c0_32, %c0_33] : memref<1024x128xbf16, #tpu.memory_space<vmem>>, vector<1024x128xbf16>
    %cst_34 = arith.constant dense<0.000000e+00> : vector<16x128xf32>
    %61 = tpu.matmul %59, %60, %cst_34 {dimension_numbers = #tpu.dot_dimension_numbers<[1], [0], [0], [1], [0, 0, 1, 1], [], []>} : vector<16x1024xbf16>, vector<1024x128xbf16>, vector<16x128xf32> -> vector<16x128xf32>
    %62 = vector.broadcast %3 : vector<1x128xf32> to vector<16x128xf32>
    %63 = arith.addf %61, %62 : vector<16x128xf32>
    %64 = arith.truncf %63 : vector<16x128xf32> to vector<16x128xbf16>
    %c0_35 = arith.constant 0 : index
    %c0_36 = arith.constant 0 : index
    %65 = vector.load %arg9[%c0_35, %c0_36] : memref<16x128xbf16, #tpu.memory_space<vmem>>, vector<16x128xbf16>
    tpu.vector_store %arg9[%c0_35, %c0_36], %64 {strides = array<i32>} : memref<16x128xbf16, #tpu.memory_space<vmem>>, vector<16x128xbf16>,
    return
  }
  func.func @transform_0(%arg0: i32) -> (i32, i32) {
    %c0_i32 = arith.constant 0 : i32
    %c0_i32_0 = arith.constant 0 : i32
    return %arg0, %c0_i32 : i32, i32
  }
  func.func @transform_1(%arg0: i32) -> (i32, i32) {
    %c0_i32 = arith.constant 0 : i32
    %c0_i32_0 = arith.constant 0 : i32
    %c0_i32_1 = arith.constant 0 : i32
    return %c0_i32, %c0_i32_0 : i32, i32
  }
  func.func @transform_2(%arg0: i32) -> (i32, i32) {
    %c0_i32 = arith.constant 0 : i32
    %c0_i32_0 = arith.constant 0 : i32
    %c0_i32_1 = arith.constant 0 : i32
    return %c0_i32, %c0_i32_0 : i32, i32
  }
  func.func @transform_3(%arg0: i32) -> (i32, i32) {
    %c0_i32 = arith.constant 0 : i32
    %c0_i32_0 = arith.constant 0 : i32
    %c0_i32_1 = arith.constant 0 : i32
    return %c0_i32, %c0_i32_0 : i32, i32
  }
  func.func @transform_4(%arg0: i32) -> (i32, i32) {
    %c0_i32 = arith.constant 0 : i32
    %c0_i32_0 = arith.constant 0 : i32
    %c0_i32_1 = arith.constant 0 : i32
    return %c0_i32, %c0_i32_0 : i32, i32
  }
  func.func @transform_5(%arg0: i32) -> (i32, i32) {
    %c0_i32 = arith.constant 0 : i32
    %c0_i32_0 = arith.constant 0 : i32
    %c0_i32_1 = arith.constant 0 : i32
    return %c0_i32, %c0_i32_0 : i32, i32
  }
  func.func @transform_6(%arg0: i32) -> (i32, i32) {
    %c0_i32 = arith.constant 0 : i32
    %c0_i32_0 = arith.constant 0 : i32
    %c0_i32_1 = arith.constant 0 : i32
    return %c0_i32, %c0_i32_0 : i32, i32
  }
  func.func @transform_7(%arg0: i32) -> (i32, i32) {
    %c0_i32 = arith.constant 0 : i32
    %c0_i32_0 = arith.constant 0 : i32
    %c0_i32_1 = arith.constant 0 : i32
    return %c0_i32, %c0_i32_0 : i32, i32
  }
  func.func @transform_8(%arg0: i32) -> (i32, i32) {
    %c0_i32 = arith.constant 0 : i32
    %c0_i32_0 = arith.constant 0 : i32
    return %arg0, %c0_i32 : i32, i32
  }
}

</mosaic_0001>

<bundles_post_ra>
// kernel: actor_critic_forward.1
= control target key start
LH: loop header
LB: loop body
LE: loop exit
PB: predicated region body
PF: predicated region fallthrough
CT: control target
= control target key end

     0   :  { %13 = vsyncpa [#allocation3], 0  ;;  %s2159_s0 = inlined_call_operand.vmem [shape: bf16[16,16], index: 0, kind: input, shape index: {}]   ;;  %s2160_s1 = inlined_call_operand.vmem [shape: bf16[16,32], index: 1, kind: input, shape index: {}]   ;;  %s2161_s2 = inlined_call_operand.hbm [shape: f32[1,32], index: 2, kind: input, shape index: {}]   ;;  %s2162_s3 = inlined_call_operand.vmem [shape: bf16[32,256], index: 3, kind: input, shape index: {}]   ;;  %s2163_s4 = inlined_call_operand.hbm [shape: bf16[256,256], index: 4, kind: input, shape index: {}]   ;;  %s2164_s5 = inlined_call_operand.hbm [shape: bf16[256,256], index: 5, kind: input, shape index: {}]   ;;  %s2165_s6 = inlined_call_operand.hbm [shape: bf16[1024,128], index: 6, kind: input, shape index: {}]   ;;  %s2166_s7 = inlined_call_operand.vmem [shape: f32[1,896], index: 7, kind: input, shape index: {}]   ;;  %s2167_s8 = inlined_call_operand.vmem [shape: bf16[16,128], index: 8, kind: output, shape index: {}]  }
   0x1   :  { %14 = vsyncpa [#allocation5], 0 }
   0x2   :  { %15 = vsyncpa [#allocation8], 0  ;;  %s1994_s27 = smov [#allocation4]   ;;  %s1900_s9 = scalar_lea.hbm %s2163_s4, 4096 }
   0x3   :  { %s37_s28 = sshll.u32 %s1994_s27, 4  ;;  %p1901_p0 = scmp.ne.s32.totalorder %s2163_s4, %s1900_s9  ;;  %s38_s28 = int_to_ptr.vmem [resolvable:$true] %s37_s28 }
   0x4   :  { %p1904_p1 = scmp.lt.u32.totalorder %s1900_s9, %s2163_s4 }
   0x6   :  { %p1906_p2 = pnand %p1904_p1, %p1901_p0 }
   0x8   :  { %1909 = shalt.err (!%p1906_p2)
}
   0x9   :  { %s1910_s14 = scalar_lea.vmem %s38_s28, 4096  ;;  %p1915_p4 = scmp.lt.s32.totalorder %s38_s28, %s38_s28 }
   0xa   :  { %p1911_p3 = scmp.ne.s32.totalorder %s38_s28, %s1910_s14  ;;  %p1916_p5 = scmp.lt.s32.totalorder %s1910_s14, %s1910_s14 }
   0xc   :  { %p1917_p6 = por %p1916_p5, %p1915_p4 }
   0xe   :  { %p1918_p7 = pnand %p1917_p6, %p1911_p3 }
  0x10   :  { %1921 = shalt.err (!%p1918_p7)
}
  0x11   :  { %s1995_s15 = smov 128   ;;  %s1996_s16 = smov 8  }
  0x12   :  { %43 = dma.hbm_to_vmem [thread:$0]  %s2163_s4, 4096, %s38_s28, [#allocation5], %s1995_s15, %s1995_s15, %s1996_s16  }
  0x13   :  { %s1997_s19 = smov [#allocation2]   ;;  %s1998_s21 = smov [#allocation6]  }
  0x14   :  { %s26_s20 = sshll.u32 %s1997_s19, 4  ;;  %s49_s22 = sshll.u32 %s1998_s21, 4  ;;  %s27_s20 = int_to_ptr.vmem [resolvable:$true] %s26_s20  ;;  %s50_s22 = int_to_ptr.vmem [resolvable:$true] %s49_s22 }
  0x15   :  { %s1922_s25 = scalar_lea.hbm %s2161_s2, 16 }
  0x16   :  { %p1923_p8 = scmp.ne.s32.totalorder %s2161_s2, %s1922_s25  ;;  %p1926_p9 = scmp.lt.u32.totalorder %s1922_s25, %s2161_s2 }
  0x18   :  { %p1928_p10 = pnand %p1926_p9, %p1923_p8 }
  0x1a   :  { %1931 = shalt.err (!%p1928_p10)
}
  0x1b   :  { %s1932_s4 = scalar_lea.vmem %s27_s20, 16  ;;  %s1936_s28 = scalar_lea.vmem %s27_s20, 32 }
  0x1c   :  { %p1933_p11 = scmp.ne.s32.totalorder %s27_s20, %s1932_s4  ;;  %p1937_p12 = scmp.lt.s32.totalorder %s27_s20, %s27_s20 }
  0x1d   :  { %p1938_p13 = scmp.lt.s32.totalorder %s1936_s28, %s1932_s4 }
  0x1f   :  { %p1939_p0 = por %p1938_p13, %p1937_p12 }
  0x21   :  { %p1940_p1 = pnand %p1939_p0, %p1933_p11 }
  0x23   :  { %1943 = shalt.err (!%p1940_p1)
}
  0x24   :  { %29 = dma.hbm_to_vmem [thread:$0]  %s2161_s2, 16, %s27_s20, [#allocation3]  }
  0x25   :  { %s1944_s13 = scalar_lea.hbm %s2164_s5, 4096 }
  0x26   :  { %p1945_p2 = scmp.ne.s32.totalorder %s2164_s5, %s1944_s13  ;;  %p1948_p3 = scmp.lt.u32.totalorder %s1944_s13, %s2164_s5 }
  0x28   :  { %p1950_p4 = pnand %p1948_p3, %p1945_p2 }
  0x2a   :  { %1953 = shalt.err (!%p1950_p4)
}
  0x2b   :  { %s1954_s21 = scalar_lea.vmem %s50_s22, 4096  ;;  %p1959_p6 = scmp.lt.s32.totalorder %s50_s22, %s50_s22 }
  0x2c   :  { %p1955_p5 = scmp.ne.s32.totalorder %s50_s22, %s1954_s21  ;;  %p1960_p7 = scmp.lt.s32.totalorder %s1954_s21, %s1954_s21 }
  0x2e   :  { %p1961_p8 = por %p1960_p7, %p1959_p6 }
  0x30   :  { %p1962_p9 = pnand %p1961_p8, %p1955_p5 }
  0x32   :  { %1965 = shalt.err (!%p1962_p9)
}
  0x33   :  { %55 = dma.hbm_to_vmem [thread:$0]  %s2164_s5, 4096, %s50_s22, [#allocation5], %s1995_s15, %s1995_s15, %s1996_s16  }
  0x34   :  { %s1999_s23 = smov [#allocation7]   ;;  %s1966_s27 = scalar_lea.hbm %s2165_s6, 8192 }
  0x35   :  { %s61_s24 = sshll.u32 %s1999_s23, 4  ;;  %p1967_p10 = scmp.ne.s32.totalorder %s2165_s6, %s1966_s27  ;;  %s62_s24 = int_to_ptr.vmem [resolvable:$true] %s61_s24 }
  0x36   :  { %p1970_p11 = scmp.lt.u32.totalorder %s1966_s27, %s2165_s6 }
  0x38   :  { %p1972_p12 = pnand %p1970_p11, %p1967_p10 }
  0x3a   :  { %1975 = shalt.err (!%p1972_p12)
}
  0x3b   :  { %s1976_s9 = scalar_lea.vmem %s62_s24, 8192  ;;  %p1981_p0 = scmp.lt.s32.totalorder %s62_s24, %s62_s24 }
  0x3c   :  { %p1977_p13 = scmp.ne.s32.totalorder %s62_s24, %s1976_s9  ;;  %p1982_p1 = scmp.lt.s32.totalorder %s1976_s9, %s1976_s9 }
  0x3e   :  { %p1983_p2 = por %p1982_p1, %p1981_p0 }
  0x40   :  { %p1984_p3 = pnand %p1983_p2, %p1977_p13 }
  0x42   :  { %1987 = shalt.err (!%p1984_p3)
}
  0x43   :  { %s2000_s5 = smov 64   ;;  %s2001_s15 = smov 4  }
  0x44   :  { %67 = dma.hbm_to_vmem [thread:$0]  %s2165_s6, 8192, %s62_s24, [#allocation8], %s2000_s5, %s2000_s5, %s2001_s15  }
  0x45   :  { %1988 = dma.done.wait [#allocation3], 16  }
  0x46   :  { %1989 = vsyncadd [#allocation3], 4294967280 }
  0x47   :  { %1990 = dma.done.wait [#allocation5], 8192  }
  0x48   :  { %1991 = vsyncadd [#allocation5], 4294959104 }
  0x49   :  { %1992 = dma.done.wait [#allocation8], 8192  }
  0x4a   :  { %1993 = vsyncadd [#allocation8], 4294959104  ;;  %v2002_v0 = vmov 0.0   ;;  %vm2003_vm0 = vmmov 0   ;;  %v1732_v1 = vld [vmem:[%s2160_s1] sm:$0xff]   ;;  %vm109_vm1 = vcmask 130048  }
  0x4b   :  { %1715 = vmatprep.subr.bf16.mxu0 %v2002_v0  ;;  %1717 = vmatprep.mubr.msk.bf16.mxu0 %vm2003_vm0, %v2002_v0  ;;  %v1733_v2 = vld [vmem:[%s2159_s0] sm:$0xff]   ;;  %v1737_v5 = vld [vmem:[%s2162_s3 + $0x14] ss:$8 sps:$4 sm:$0xff]   ;;  %v1739_v6 = vld [vmem:[%s2162_s3 + $0x10] ss:$8 sps:$4 sm:$0xff]   ;;  %v2004_v7 = vmov 0  }
  0x4c   :  { %1716 = vmatpush3.bf16.msra.mxu0 %v1732_v1  ;;  %v1734_v3 = vld [vmem:[%s2162_s3 + $0x4] ss:$8 sps:$4 sm:$0xff]   ;;  %v1736_v4 = vld [vmem:[%s2162_s3] ss:$8 sps:$4 sm:$0xff]   ;;  %228 = vmatprep.mubr.bf16.mxu1 %v2004_v7  ;;  %v1746_v12 = vld [vmem:[#allocation4 + $0x10] ss:$8 sps:$4 sm:$0xff]  }
  0x4d   :  { %196 = vmatprep.subr.bf16.mxu1 %v1734_v3  ;;  %v1740_v8 = vld [vmem:[#allocation4] ss:$8 sps:$4 sm:$0xff]   ;;  %v1742_v9 = vld [vmem:[#allocation4 + $0x4] ss:$8 sps:$4 sm:$0xff]   ;;  %v1748_v11 = vld [vmem:[#allocation4 + $0x14] ss:$8 sps:$4 sm:$0xff]  }
  0x4e   :  { %197 = vmatpush1.bf16.msra.mxu1 %v1736_v4  ;;  %v1745_v10 = vld [vmem:[#allocation6 + $0x4] ss:$8 sps:$4 sm:$0xff]   ;;  %450 = vmatprep.subr.bf16.mxu0 %v1742_v9  ;;  %v1752_v14 = vld [vmem:[#allocation4 + $0x20] ss:$8 sps:$4 sm:$0xff]   ;;  %v1760_v15 = vld [vmem:[#allocation4 + $0x34] ss:$8 sps:$4 sm:$0xff]  }
  0x4f   :  { %1718 = vmatmul.mubr.msk.bf16.vlgmr.msra.gmra.mrb[0].mxu0 %vm109_vm1, %v1733_v2  ;;  %198 = vmatprep.subr.bf16.mxu1 %v1737_v5  ;;  %v1754_v13 = vld [vmem:[#allocation4 + $0x24] ss:$8 sps:$4 sm:$0xff]   ;;  %v1758_v16 = vld [vmem:[#allocation4 + $0x30] ss:$8 sps:$4 sm:$0xff]   ;;  %v1764_v18 = vld [vmem:[#allocation4 + $0x40] ss:$8 sps:$4 sm:$0xff]  }
  0x50   :  { %451 = vmatpush1.bf16.msra.mxu0 %v1740_v8  ;;  %v1766_v17 = vld [vmem:[#allocation4 + $0x44] ss:$8 sps:$4 sm:$0xff]   ;;  %v1772_v19 = vld [vmem:[#allocation4 + $0x54] ss:$8 sps:$4 sm:$0xff]   ;;  %v1770_v20 = vld [vmem:[#allocation4 + $0x50] ss:$8 sps:$4 sm:$0xff]  }
  0x51   :  { %452 = vmatprep.subr.bf16.mxu0 %v1748_v11  ;;  %v1778_v21 = vld [vmem:[#allocation4 + $0x64] ss:$8 sps:$4 sm:$0xff]   ;;  %v1776_v22 = vld [vmem:[#allocation4 + $0x60] ss:$8 sps:$4 sm:$0xff]   ;;  %v1784_v23 = vld [vmem:[#allocation4 + $0x74] ss:$8 sps:$4 sm:$0xff]  }
  0x52   :  { %199 = vmatpush1.bf16.msra.mxu1 %v1739_v6  ;;  %v1782_v24 = vld [vmem:[#allocation4 + $0x70] ss:$8 sps:$4 sm:$0xff]   ;;  %v1790_v25 = vld [vmem:[#allocation4 + $0x84] ss:$8 sps:$4 sm:$0xff]   ;;  %v1788_v26 = vld [vmem:[#allocation4 + $0x80] ss:$8 sps:$4 sm:$0xff]  }
  0x53   :  { %720 = vmatprep.subr.bf16.mxu1 %v1745_v10  ;;  %v1796_v27 = vld [vmem:[#allocation4 + $0x94] ss:$8 sps:$4 sm:$0xff]   ;;  %v1794_v28 = vld [vmem:[#allocation4 + $0x90] ss:$8 sps:$4 sm:$0xff]   ;;  %v1802_v29 = vld [vmem:[#allocation4 + $0xa4] ss:$8 sps:$4 sm:$0xff]  }
  0x54   :  { %453 = vmatpush1.bf16.msra.mxu0 %v1746_v12  ;;  %v1800_v30 = vld [vmem:[#allocation4 + $0xa0] ss:$8 sps:$4 sm:$0xff]   ;;  %v1808_v31 = vld [vmem:[#allocation4 + $0xb4] ss:$8 sps:$4 sm:$0xff]   ;;  %v1806_v32 = vld [vmem:[#allocation4 + $0xb0] ss:$8 sps:$4 sm:$0xff]  }
  0x55   :  { %454 = vmatprep.subr.bf16.mxu0 %v1754_v13  ;;  %v1814_v33 = vld [vmem:[#allocation4 + $0xc4] ss:$8 sps:$4 sm:$0xff]   ;;  %v1812_v34 = vld [vmem:[#allocation4 + $0xc0] ss:$8 sps:$4 sm:$0xff]   ;;  %v1478_v35 = vld [vmem:[#allocation2] ss:$0 sm:$0xff] }
  0x56   :  { %vm192_vm2 = vcmask 261120   ;;  %v1743_v44 = vld [vmem:[#allocation6] ss:$8 sps:$4 sm:$0xff]   ;;  %v1751_v46 = vld [vmem:[#allocation6 + $0x14] ss:$8 sps:$4 sm:$0xff]  }
  0x57   :  { %v1749_v47 = vld [vmem:[#allocation6 + $0x10] ss:$8 sps:$4 sm:$0xff]   ;;  %v1757_v48 = vld [vmem:[#allocation6 + $0x24] ss:$8 sps:$4 sm:$0xff]   ;;  %v1755_v49 = vld [vmem:[#allocation6 + $0x20] ss:$8 sps:$4 sm:$0xff]  }
  0x58   :  { %455 = vmatpush1.bf16.msra.mxu0 %v1752_v14  ;;  %v1763_v50 = vld [vmem:[#allocation6 + $0x34] ss:$8 sps:$4 sm:$0xff]   ;;  %v1761_v51 = vld [vmem:[#allocation6 + $0x30] ss:$8 sps:$4 sm:$0xff]   ;;  %v1769_v52 = vld [vmem:[#allocation6 + $0x44] ss:$8 sps:$4 sm:$0xff]  }
  0x59   :  { %456 = vmatprep.subr.bf16.mxu0 %v1760_v15  ;;  %v1767_v53 = vld [vmem:[#allocation6 + $0x40] ss:$8 sps:$4 sm:$0xff]   ;;  %v1775_v54 = vld [vmem:[#allocation6 + $0x54] ss:$8 sps:$4 sm:$0xff]   ;;  %v1773_v55 = vld [vmem:[#allocation6 + $0x50] ss:$8 sps:$4 sm:$0xff]  }
  0x5a   :  { %v1781_v56 = vld [vmem:[#allocation6 + $0x64] ss:$8 sps:$4 sm:$0xff]   ;;  %v1779_v57 = vld [vmem:[#allocation6 + $0x60] ss:$8 sps:$4 sm:$0xff]   ;;  %v1787_v58 = vld [vmem:[#allocation6 + $0x74] ss:$8 sps:$4 sm:$0xff]  }
  0x5b   :  { %v1785_v59 = vld [vmem:[#allocation6 + $0x70] ss:$8 sps:$4 sm:$0xff]   ;;  %v1793_v60 = vld [vmem:[#allocation6 + $0x84] ss:$8 sps:$4 sm:$0xff]   ;;  %v1791_v61 = vld [vmem:[#allocation6 + $0x80] ss:$8 sps:$4 sm:$0xff]  }
  0x5c   :  { %457 = vmatpush1.bf16.msra.mxu0 %v1758_v16  ;;  %v1799_v62 = vld [vmem:[#allocation6 + $0x94] ss:$8 sps:$4 sm:$0xff]   ;;  %v1797_v63 = vld [vmem:[#allocation6 + $0x90] ss:$8 sps:$4 sm:$0xff]   ;;  %v1805_v0 = vld [vmem:[#allocation6 + $0xa4] ss:$8 sps:$4 sm:$0xff]  }
  0x5d   :  { %458 = vmatprep.subr.bf16.mxu0 %v1766_v17  ;;  %v1803_v1 = vld [vmem:[#allocation6 + $0xa0] ss:$8 sps:$4 sm:$0xff]   ;;  %v1811_v2 = vld [vmem:[#allocation6 + $0xb4] ss:$8 sps:$4 sm:$0xff]   ;;  %v1809_v3 = vld [vmem:[#allocation6 + $0xb0] ss:$8 sps:$4 sm:$0xff]  }
  0x5e   :  { %v1817_v4 = vld [vmem:[#allocation6 + $0xc4] ss:$8 sps:$4 sm:$0xff]   ;;  %v1815_v5 = vld [vmem:[#allocation6 + $0xc0] ss:$8 sps:$4 sm:$0xff]   ;;  %v1820_v6 = vld [vmem:[#allocation4 + $0xd4] ss:$8 sps:$4 sm:$0xff]  }
  0x5f   :  { %v1818_v7 = vld [vmem:[#allocation4 + $0xd0] ss:$8 sps:$4 sm:$0xff]   ;;  %v1823_v8 = vld [vmem:[#allocation6 + $0xd4] ss:$8 sps:$4 sm:$0xff]   ;;  %v1826_v10 = vld [vmem:[#allocation4 + $0xe4] ss:$8 sps:$4 sm:$0xff]  }
  0x60   :  { %459 = vmatpush1.bf16.msra.mxu0 %v1764_v18  ;;  %v1821_v9 = vld [vmem:[#allocation6 + $0xd0] ss:$8 sps:$4 sm:$0xff]   ;;  %v1824_v11 = vld [vmem:[#allocation4 + $0xe0] ss:$8 sps:$4 sm:$0xff]   ;;  %v1829_v12 = vld [vmem:[#allocation6 + $0xe4] ss:$8 sps:$4 sm:$0xff]  }
  0x61   :  { %460 = vmatprep.subr.bf16.mxu0 %v1772_v19  ;;  %v1827_v13 = vld [vmem:[#allocation6 + $0xe0] ss:$8 sps:$4 sm:$0xff]   ;;  %v1832_v14 = vld [vmem:[#allocation4 + $0xf4] ss:$8 sps:$4 sm:$0xff]   ;;  %v1830_v15 = vld [vmem:[#allocation4 + $0xf0] ss:$8 sps:$4 sm:$0xff]  }
  0x62   :  { %v1835_v16 = vld [vmem:[#allocation6 + $0xf4] ss:$8 sps:$4 sm:$0xff]   ;;  %v1833_v17 = vld [vmem:[#allocation6 + $0xf0] ss:$8 sps:$4 sm:$0xff]   ;;  %v1836_v18 = vld [vmem:[#allocation7 + $0x40] sm:$0xff]  }
  0x63   :  { %v1838_v19 = vld [vmem:[#allocation7 + $0xc0] sm:$0xff]  }
  0x64   :  { %461 = vmatpush1.bf16.msra.mxu0 %v1770_v20  ;;  %v162_v20 = vlaneseq }
  0x65   :  { %462 = vmatprep.subr.bf16.mxu0 %v1778_v21 }
  0x66   :  { %v163_v21 = vshrl.u32 %v162_v20, 7  ;;  %v85_v20 = vld [vmem:[%s2166_s7 + $0x4] sm:$0x3] }
  0x68   :  { %463 = vmatpush1.bf16.msra.mxu0 %v1776_v22  ;;  %v2122_v22 = vsub.s32 0, %v163_v21 }
  0x69   :  { %464 = vmatprep.subr.bf16.mxu0 %v1784_v23  ;;  %v83_v23 = vld [vmem:[%s2166_s7] sm:$0x3] }
  0x6c   :  { %465 = vmatpush1.bf16.msra.mxu0 %v1782_v24  ;;  %v2127_v24 = vsub.s32 1, %v163_v21 }
  0x6d   :  { %466 = vmatprep.subr.bf16.mxu0 %v1790_v25  ;;  %v165_v25 = vrot.slane %v83_v23, %v2122_v22 }
  0x70   :  { %467 = vmatpush1.bf16.msra.mxu0 %v1788_v26  ;;  %v169_v26 = vrot.slane %v83_v23, %v2127_v24 }
  0x71   :  { %468 = vmatprep.subr.bf16.mxu0 %v1796_v27 }
  0x74   :  { %469 = vmatpush1.bf16.msra.mxu0 %v1794_v28 }
  0x75   :  { %470 = vmatprep.subr.bf16.mxu0 %v1802_v29 }
  0x78   :  { %471 = vmatpush1.bf16.msra.mxu0 %v1800_v30 }
  0x79   :  { %472 = vmatprep.subr.bf16.mxu0 %v1808_v31 }
  0x7c   :  { %473 = vmatpush1.bf16.msra.mxu0 %v1806_v32 }
  0x7d   :  { %474 = vmatprep.subr.bf16.mxu0 %v1814_v33 }
  0x80   :  { %475 = vmatpush1.bf16.msra.mxu0 %v1812_v34 }
  0x81   :  { %476 = vmatprep.subr.bf16.mxu0 %v1820_v6  ;;  %v1857_v6 = vld [vmem:[#allocation7 + $0x28] sm:$0xff]  }
  0x84   :  { %477 = vmatpush1.bf16.msra.mxu0 %v1818_v7  ;;  %v1858_v7 = vld [vmem:[#allocation7 + $0xe8] sm:$0xff]  }
  0x85   :  { %478 = vmatprep.subr.bf16.mxu0 %v1826_v10  ;;  %v1861_v10 = vld [vmem:[#allocation7 + $0x30] sm:$0xff]  }
  0x88   :  { %479 = vmatpush1.bf16.msra.mxu0 %v1824_v11  ;;  %v1862_v11 = vld [vmem:[#allocation7 + $0xf0] sm:$0xff]  }
  0x89   :  { %480 = vmatprep.subr.bf16.mxu0 %v1832_v14  ;;  %v1865_v14 = vld [vmem:[#allocation7 + $0x38] sm:$0xff]  }
  0x8c   :  { %481 = vmatpush1.bf16.msra.mxu0 %v1830_v15  ;;  %v1866_v15 = vld [vmem:[#allocation7 + $0xf8] sm:$0xff]  }
  0x8d   :  { %1627 = vmatprep.subr.bf16.mxu0 %v1836_v18  ;;  %v1870_v18 = vld [vmem:[#allocation7 + $0x1c0] sm:$0xff]  }
 0x122   :  { %v147_v36 = vpop.f32.mrb[0].mxu0 }
 0x123   :  { %v148_v37 = vadd.f32 %v1478_v35, %v147_v36  ;;  %v1719_v38 = vpop.f32.mrb[1].mxu0 }
 0x124   :  { %v150_v39 = vpop.f32.mrb[2].mxu0 }
 0x125   :  { %v151_v40 = vadd.f32 %v1478_v35, %v150_v39  ;;  %v1720_v41 = vpop.f32.mrb[3].mxu0  ;;  %v154_v42 = vmax.f32 %v148_v37, 0.0 }
 0x127   :  { %v155_v43 = vmax.f32 %v151_v40, 0.0 }
 0x129   :  { %v156_v45 = vpack.c.bf16 %v155_v43, %v154_v42 }
 0x12b   :  { %1486 = vmatmul.mubr.msk.bf16.vlgmr.msra.gmra.mrb[0].mxu1 %vm192_vm2, %v156_v45 }
 0x12c   :  { %721 = vmatpush1.bf16.msra.mxu1 %v1743_v44 }
 0x12d   :  { %722 = vmatprep.subr.bf16.mxu1 %v1751_v46 }
 0x130   :  { %723 = vmatpush1.bf16.msra.mxu1 %v1749_v47 }
 0x131   :  { %724 = vmatprep.subr.bf16.mxu1 %v1757_v48 }
 0x134   :  { %725 = vmatpush1.bf16.msra.mxu1 %v1755_v49 }
 0x135   :  { %726 = vmatprep.subr.bf16.mxu1 %v1763_v50  ;;  %v1837_v50 = vld [vmem:[#allocation7] sm:$0xff]  }
 0x138   :  { %727 = vmatpush1.bf16.msra.mxu1 %v1761_v51 }
 0x139   :  { %728 = vmatprep.subr.bf16.mxu1 %v1769_v52  ;;  %v1839_v52 = vld [vmem:[#allocation7 + $0x80] sm:$0xff]  }
 0x13c   :  { %729 = vmatpush1.bf16.msra.mxu1 %v1767_v53  ;;  %v1840_v53 = vld [vmem:[#allocation7 + $0x48] sm:$0xff]  }
 0x13d   :  { %730 = vmatprep.subr.bf16.mxu1 %v1775_v54  ;;  %v1842_v54 = vld [vmem:[#allocation7 + $0xc8] sm:$0xff]  }
 0x140   :  { %731 = vmatpush1.bf16.msra.mxu1 %v1773_v55  ;;  %v1841_v55 = vld [vmem:[#allocation7 + $0x8] sm:$0xff]  }
 0x141   :  { %732 = vmatprep.subr.bf16.mxu1 %v1781_v56  ;;  %v1843_v56 = vld [vmem:[#allocation7 + $0x88] sm:$0xff]  }
 0x144   :  { %733 = vmatpush1.bf16.msra.mxu1 %v1779_v57  ;;  %v1844_v57 = vld [vmem:[#allocation7 + $0x50] sm:$0xff]  }
 0x145   :  { %734 = vmatprep.subr.bf16.mxu1 %v1787_v58  ;;  %v1846_v58 = vld [vmem:[#allocation7 + $0xd0] sm:$0xff]  }
 0x148   :  { %735 = vmatpush1.bf16.msra.mxu1 %v1785_v59  ;;  %v1845_v59 = vld [vmem:[#allocation7 + $0x10] sm:$0xff]  }
 0x149   :  { %736 = vmatprep.subr.bf16.mxu1 %v1793_v60  ;;  %v1847_v60 = vld [vmem:[#allocation7 + $0x90] sm:$0xff]  }
 0x14c   :  { %737 = vmatpush1.bf16.msra.mxu1 %v1791_v61  ;;  %v1848_v61 = vld [vmem:[#allocation7 + $0x58] sm:$0xff]  }
 0x14d   :  { %738 = vmatprep.subr.bf16.mxu1 %v1799_v62  ;;  %v1850_v62 = vld [vmem:[#allocation7 + $0xd8] sm:$0xff]  }
 0x150   :  { %739 = vmatpush1.bf16.msra.mxu1 %v1797_v63  ;;  %v1849_v63 = vld [vmem:[#allocation7 + $0x18] sm:$0xff]  }
 0x151   :  { %740 = vmatprep.subr.bf16.mxu1 %v1805_v0  ;;  %v1851_v0 = vld [vmem:[#allocation7 + $0x98] sm:$0xff]  }
 0x154   :  { %741 = vmatpush1.bf16.msra.mxu1 %v1803_v1  ;;  %v1852_v1 = vld [vmem:[#allocation7 + $0x60] sm:$0xff]  }
 0x155   :  { %742 = vmatprep.subr.bf16.mxu1 %v1811_v2  ;;  %v1854_v2 = vld [vmem:[#allocation7 + $0xe0] sm:$0xff]  }
 0x158   :  { %743 = vmatpush1.bf16.msra.mxu1 %v1809_v3  ;;  %v1853_v3 = vld [vmem:[#allocation7 + $0x20] sm:$0xff]  }
 0x159   :  { %744 = vmatprep.subr.bf16.mxu1 %v1817_v4  ;;  %v1855_v4 = vld [vmem:[#allocation7 + $0xa0] sm:$0xff]  }
 0x15c   :  { %745 = vmatpush1.bf16.msra.mxu1 %v1815_v5  ;;  %v1856_v5 = vld [vmem:[#allocation7 + $0x68] sm:$0xff]  }
 0x15d   :  { %746 = vmatprep.subr.bf16.mxu1 %v1823_v8  ;;  %v1859_v8 = vld [vmem:[#allocation7 + $0xa8] sm:$0xff]  }
 0x160   :  { %747 = vmatpush1.bf16.msra.mxu1 %v1821_v9  ;;  %v1860_v9 = vld [vmem:[#allocation7 + $0x70] sm:$0xff]  }
 0x161   :  { %748 = vmatprep.subr.bf16.mxu1 %v1829_v12  ;;  %v1863_v12 = vld [vmem:[#allocation7 + $0xb0] sm:$0xff]  }
 0x164   :  { %749 = vmatpush1.bf16.msra.mxu1 %v1827_v13  ;;  %v1864_v13 = vld [vmem:[#allocation7 + $0x78] sm:$0xff]  }
 0x165   :  { %750 = vmatprep.subr.bf16.mxu1 %v1835_v16  ;;  %v1867_v16 = vld [vmem:[#allocation7 + $0xb8] sm:$0xff]  }
 0x168   :  { %751 = vmatpush1.bf16.msra.mxu1 %v1833_v17  ;;  %v1868_v17 = vld [vmem:[#allocation7 + $0x140] sm:$0xff]  }
 0x169   :  { %1649 = vmatprep.subr.bf16.mxu1 %v1838_v19  ;;  %v84_v19 = vld [vmem:[%s2166_s7 + $0x2] sm:$0x3] }
 0x16a   :  { %v283_v21 = vrot.slane %v84_v19, %v2122_v22  ;;  %v287_v23 = vrot.slane %v84_v19, %v2127_v24  ;;  %v1879_v19 = vld [vmem:[#allocation7 + $0x190] sm:$0xff]  }
 0x1fe   :  { %v230_v27 = vpop.f32.mrb[0].mxu1 }
 0x1ff   :  { %v231_v28 = vadd.f32 %v230_v27, %v165_v25  ;;  %v232_v29 = vpop.f32.mrb[1].mxu1  ;;  %v557_v27 = vrot.slane %v85_v20, %v2127_v24 }
 0x200   :  { %v233_v30 = vadd.f32 %v232_v29, %v169_v26  ;;  %v234_v31 = vpop.f32.mrb[2].mxu1 }
 0x201   :  { %v241_v32 = vsub.f32 0.0, %v231_v28  ;;  %v235_v33 = vadd.f32 %v234_v31, %v165_v25  ;;  %v236_v34 = vpop.f32.mrb[3].mxu1  ;;  %v239_v37 = vmax.f32 %v231_v28, 0.0  ;;  %v553_v25 = vrot.slane %v85_v20, %v2122_v22  ;;  %v1882_v20 = vld [vmem:[#allocation7 + $0x1d8] sm:$0xff]  }
 0x202   :  { %v511_v35 = vsub.f32 0.0, %v233_v30  ;;  %v237_v36 = vadd.f32 %v236_v34, %v169_v26  ;;  %v509_v40 = vmax.f32 %v233_v30, 0.0 }
 0x203   :  { %v240_v38 = vmax.f32 %v235_v33, 0.0  ;;  %v242_v39 = vsub.f32 0.0, %v235_v33  ;;  %v243_v43 = vmax.f32 %v241_v32, 0.0 }
 0x204   :  { %v510_v41 = vmax.f32 %v237_v36, 0.0  ;;  %v512_v42 = vsub.f32 0.0, %v237_v36  ;;  %v513_v46 = vmax.f32 %v511_v35, 0.0 }
 0x205   :  { %v244_v44 = vmax.f32 %v242_v39, 0.0  ;;  %v245_v45 = vpack.c.bf16 %v240_v38, %v239_v37 }
 0x206   :  { %v514_v47 = vmax.f32 %v512_v42, 0.0  ;;  %v515_v48 = vpack.c.bf16 %v510_v41, %v509_v40 }
 0x207   :  { %v246_v49 = vpack.c.bf16 %v244_v44, %v243_v43 }
 0x208   :  { %v516_v51 = vpack.c.bf16 %v514_v47, %v513_v46 }
 0x209   :  { %482 = vmatprep.mubr.bf16.mxu0 %v246_v49 }
 0x20a   :  { %483 = vmatmul.mubr.bf16.vlgmr.msra.gmra.mrb[4].mxu0 %v245_v45  ;;  %752 = vmatprep.mubr.bf16.mxu1 %v516_v51 }
 0x20b   :  { %753 = vmatmul.mubr.bf16.vlgmr.msra.gmra.mrb[4].mxu1 %v515_v48  ;;  %1628 = vmatpush3.bf16.msra.mxu0 %v1837_v50 }
 0x20c   :  { %1650 = vmatpush3.bf16.msra.mxu1 %v1839_v52  ;;  %1629 = vmatprep.subr.bf16.mxu0 %v1840_v53 }
 0x20d   :  { %1651 = vmatprep.subr.bf16.mxu1 %v1842_v54 }
 0x20f   :  { %1630 = vmatpush3.bf16.msra.mxu0 %v1841_v55 }
 0x210   :  { %1652 = vmatpush3.bf16.msra.mxu1 %v1843_v56  ;;  %1631 = vmatprep.subr.bf16.mxu0 %v1844_v57 }
 0x211   :  { %1653 = vmatprep.subr.bf16.mxu1 %v1846_v58 }
 0x213   :  { %1632 = vmatpush3.bf16.msra.mxu0 %v1845_v59 }
 0x214   :  { %1654 = vmatpush3.bf16.msra.mxu1 %v1847_v60  ;;  %1633 = vmatprep.subr.bf16.mxu0 %v1848_v61 }
 0x215   :  { %1655 = vmatprep.subr.bf16.mxu1 %v1850_v62 }
 0x217   :  { %1634 = vmatpush3.bf16.msra.mxu0 %v1849_v63 }
 0x218   :  { %1656 = vmatpush3.bf16.msra.mxu1 %v1851_v0  ;;  %1635 = vmatprep.subr.bf16.mxu0 %v1852_v1  ;;  %v1869_v0 = vld [vmem:[#allocation7 + $0x100] sm:$0xff]  }
 0x219   :  { %1657 = vmatprep.subr.bf16.mxu1 %v1854_v2 }
 0x21b   :  { %1636 = vmatpush3.bf16.msra.mxu0 %v1853_v3 }
 0x21c   :  { %1658 = vmatpush3.bf16.msra.mxu1 %v1855_v4  ;;  %1637 = vmatprep.subr.bf16.mxu0 %v1856_v5 }
 0x21d   :  { %1659 = vmatprep.subr.bf16.mxu1 %v1858_v7 }
 0x21f   :  { %1638 = vmatpush3.bf16.msra.mxu0 %v1857_v6 }
 0x220   :  { %1660 = vmatpush3.bf16.msra.mxu1 %v1859_v8  ;;  %1639 = vmatprep.subr.bf16.mxu0 %v1860_v9  ;;  %v1871_v8 = vld [vmem:[#allocation7 + $0x180] sm:$0xff]   ;;  %v1872_v9 = vld [vmem:[#allocation7 + $0x148] sm:$0xff]  }
 0x221   :  { %1661 = vmatprep.subr.bf16.mxu1 %v1862_v11  ;;  %v1874_v11 = vld [vmem:[#allocation7 + $0x1c8] sm:$0xff]  }
 0x223   :  { %1640 = vmatpush3.bf16.msra.mxu0 %v1861_v10 }
 0x224   :  { %1662 = vmatpush3.bf16.msra.mxu1 %v1863_v12  ;;  %1641 = vmatprep.subr.bf16.mxu0 %v1864_v13  ;;  %v1873_v13 = vld [vmem:[#allocation7 + $0x108] sm:$0xff]  }
 0x225   :  { %1663 = vmatprep.subr.bf16.mxu1 %v1866_v15  ;;  %v1875_v15 = vld [vmem:[#allocation7 + $0x188] sm:$0xff]  }
 0x227   :  { %1642 = vmatpush3.bf16.msra.mxu0 %v1865_v14  ;;  %v1876_v14 = vld [vmem:[#allocation7 + $0x150] sm:$0xff]  }
 0x228   :  { %1664 = vmatpush3.bf16.msra.mxu1 %v1867_v16  ;;  %1671 = vmatprep.subr.bf16.mxu0 %v1868_v17  ;;  %v1878_v16 = vld [vmem:[#allocation7 + $0x1d0] sm:$0xff]  }
 0x229   :  { %1693 = vmatprep.subr.bf16.mxu1 %v1870_v18  ;;  %v1877_v17 = vld [vmem:[#allocation7 + $0x110] sm:$0xff]   ;;  %v1880_v18 = vld [vmem:[#allocation7 + $0x158] sm:$0xff]  }
 0x2dd   :  { %v484_v26 = vpop.f32.mrb[4].mxu0 }
 0x2de   :  { %v485_v28 = vadd.f32 %v484_v26, %v283_v21  ;;  %v486_v29 = vpop.f32.mrb[5].mxu0  ;;  %v754_v30 = vpop.f32.mrb[4].mxu1  ;;  %v1886_v26 = vld [vmem:[#allocation7 + $0x1e0] sm:$0xff]  }
 0x2df   :  { %v487_v31 = vadd.f32 %v486_v29, %v287_v23  ;;  %v755_v32 = vadd.f32 %v754_v30, %v553_v25  ;;  %v488_v33 = vpop.f32.mrb[6].mxu0  ;;  %v756_v34 = vpop.f32.mrb[5].mxu1  ;;  %v1887_v29 = vld [vmem:[#allocation7 + $0x1a0] sm:$0xff]   ;;  %v1890_v30 = vld [vmem:[#allocation7 + $0x1e8] sm:$0xff]  }
 0x2e0   :  { %v497_v35 = vsub.f32 0.0, %v485_v28  ;;  %v489_v36 = vadd.f32 %v488_v33, %v283_v21  ;;  %v490_v37 = vpop.f32.mrb[7].mxu0  ;;  %v758_v38 = vpop.f32.mrb[6].mxu1  ;;  %v493_v39 = vmax.f32 %v485_v28, 0.0  ;;  %v757_v40 = vadd.f32 %v756_v34, %v557_v27  ;;  %v1881_v21 = vld [vmem:[#allocation7 + $0x118] sm:$0xff]   ;;  %v1888_v28 = vld [vmem:[#allocation7 + $0x168] sm:$0xff]  }
 0x2e1   :  { %v760_v41 = vpop.f32.mrb[7].mxu1  ;;  %v494_v42 = vmax.f32 %v487_v31, 0.0  ;;  %v498_v43 = vsub.f32 0.0, %v487_v31  ;;  %v763_v24 = vmax.f32 %v755_v32, 0.0  ;;  %v767_v46 = vsub.f32 0.0, %v755_v32  ;;  %v1889_v31 = vld [vmem:[#allocation7 + $0x128] sm:$0xff]  }
 0x2e2   :  { %v495_v22 = vmax.f32 %v489_v36, 0.0  ;;  %v499_v44 = vsub.f32 0.0, %v489_v36  ;;  %v501_v45 = vmax.f32 %v497_v35, 0.0  ;;  %v491_v47 = vadd.f32 %v490_v37, %v287_v23  ;;  %v1884_v23 = vld [vmem:[#allocation7 + $0x160] sm:$0xff]   ;;  %v1892_v32 = vld [vmem:[#allocation7 + $0x170] sm:$0xff]   ;;  %v1891_v33 = vld [vmem:[#allocation7 + $0x1a8] sm:$0xff]  }
 0x2e3   :  { %v759_v50 = vadd.f32 %v758_v38, %v553_v25  ;;  %v761_v51 = vadd.f32 %v760_v41, %v557_v27  ;;  %v764_v52 = vmax.f32 %v757_v40, 0.0  ;;  %v768_v53 = vsub.f32 0.0, %v757_v40  ;;  %v1883_v25 = vld [vmem:[#allocation7 + $0x198] sm:$0xff]   ;;  %v1885_v27 = vld [vmem:[#allocation7 + $0x120] sm:$0xff]   ;;  %v1894_v34 = vld [vmem:[#allocation7 + $0x1f0] sm:$0xff]  }
 0x2e4   :  { %v503_v48 = vmax.f32 %v499_v44, 0.0  ;;  %v505_v49 = vpack.c.bf16 %v495_v22, %v493_v39  ;;  %v496_v54 = vmax.f32 %v491_v47, 0.0  ;;  %v500_v55 = vsub.f32 0.0, %v491_v47  ;;  %v1893_v35 = vld [vmem:[#allocation7 + $0x130] sm:$0xff]   ;;  %v1896_v36 = vld [vmem:[#allocation7 + $0x178] sm:$0xff]  }
 0x2e5   :  { %v765_v57 = vmax.f32 %v759_v50, 0.0  ;;  %v769_v58 = vsub.f32 0.0, %v759_v50  ;;  %v766_v59 = vmax.f32 %v761_v51, 0.0  ;;  %v502_v60 = vmax.f32 %v498_v43, 0.0  ;;  %v1895_v37 = vld [vmem:[#allocation7 + $0x1b0] sm:$0xff]   ;;  %v1898_v38 = vld [vmem:[#allocation7 + $0x1f8] sm:$0xff]  }
 0x2e6   :  { %v507_v56 = vpack.c.bf16 %v503_v48, %v501_v45  ;;  %v504_v61 = vmax.f32 %v500_v55, 0.0  ;;  %v770_v62 = vsub.f32 0.0, %v761_v51  ;;  %v506_v63 = vpack.c.bf16 %v496_v54, %v494_v42  ;;  %v1897_v39 = vld [vmem:[#allocation7 + $0x138] sm:$0xff]   ;;  %v1551_v42 = vld [vmem:[%s2166_s7 + $0x6] ss:$0 sm:$0xff] }
 0x2e7   :  { %v2141_v1 = vmax.f32 %v767_v46, 0.0  ;;  %v2143_v2 = vmax.f32 %v769_v58, 0.0  ;;  %v2145_v3 = vpack.c.bf16 %v765_v57, %v763_v24  ;;  %v776_v4 = vpack.c.bf16 %v766_v59, %v764_v52  ;;  %v1899_v40 = vld [vmem:[#allocation7 + $0x1b8] sm:$0xff]  }
 0x2e8   :  { %v772_v5 = vmax.f32 %v768_v53, 0.0  ;;  %v774_v6 = vmax.f32 %v770_v62, 0.0  ;;  %1329 = vmatprep.mubr.bf16.mxu0 %v506_v63  ;;  %v508_v7 = vpack.c.bf16 %v504_v61, %v502_v60 }
 0x2e9   :  { %v777_v10 = vpack.c.bf16 %v2143_v2, %v2141_v1  ;;  %1330 = vmatmul.mubr.bf16.vlgmr.msra.gmra.mrb[8].mxu0 %v505_v49 }
 0x2ea   :  { %1672 = vmatpush3.bf16.msra.mxu0 %v1869_v0  ;;  %1370 = vmatprep.mubr.bf16.mxu1 %v508_v7  ;;  %v778_v12 = vpack.c.bf16 %v774_v6, %v772_v5 }
 0x2eb   :  { %1411 = vmatprep.mubr.bf16.mxu0 %v776_v4  ;;  %1371 = vmatmul.mubr.bf16.vlgmr.msra.gmra.mrb[8].mxu1 %v507_v56 }
 0x2ec   :  { %1694 = vmatpush3.bf16.msra.mxu1 %v1871_v8  ;;  %1673 = vmatprep.subr.bf16.mxu0 %v1872_v9 }
 0x2ed   :  { %1452 = vmatprep.mubr.bf16.mxu1 %v778_v12  ;;  %1695 = vmatprep.subr.bf16.mxu1 %v1874_v11 }
 0x2ee   :  { %1674 = vmatpush3.bf16.msra.mxu0 %v1873_v13 }
 0x2ef   :  { %1675 = vmatprep.subr.bf16.mxu0 %v1876_v14 }
 0x2f0   :  { %1696 = vmatpush3.bf16.msra.mxu1 %v1875_v15 }
 0x2f1   :  { %1697 = vmatprep.subr.bf16.mxu1 %v1878_v16 }
 0x2f2   :  { %1676 = vmatpush3.bf16.msra.mxu0 %v1877_v17 }
 0x2f3   :  { %1677 = vmatprep.subr.bf16.mxu0 %v1880_v18 }
 0x2f4   :  { %1698 = vmatpush3.bf16.msra.mxu1 %v1879_v19 }
 0x2f5   :  { %1699 = vmatprep.subr.bf16.mxu1 %v1882_v20 }
 0x2f6   :  { %1678 = vmatpush3.bf16.msra.mxu0 %v1881_v21 }
 0x2f7   :  { %1679 = vmatprep.subr.bf16.mxu0 %v1884_v23 }
 0x2f8   :  { %1700 = vmatpush3.bf16.msra.mxu1 %v1883_v25 }
 0x2f9   :  { %1701 = vmatprep.subr.bf16.mxu1 %v1886_v26 }
 0x2fa   :  { %1680 = vmatpush3.bf16.msra.mxu0 %v1885_v27 }
 0x2fb   :  { %1681 = vmatprep.subr.bf16.mxu0 %v1888_v28 }
 0x2fc   :  { %1702 = vmatpush3.bf16.msra.mxu1 %v1887_v29 }
 0x2fd   :  { %1703 = vmatprep.subr.bf16.mxu1 %v1890_v30 }
 0x2fe   :  { %1682 = vmatpush3.bf16.msra.mxu0 %v1889_v31 }
 0x2ff   :  { %1683 = vmatprep.subr.bf16.mxu0 %v1892_v32 }
 0x300   :  { %1704 = vmatpush3.bf16.msra.mxu1 %v1891_v33 }
 0x301   :  { %1705 = vmatprep.subr.bf16.mxu1 %v1894_v34 }
 0x302   :  { %1684 = vmatpush3.bf16.msra.mxu0 %v1893_v35 }
 0x303   :  { %1685 = vmatprep.subr.bf16.mxu0 %v1896_v36 }
 0x304   :  { %1706 = vmatpush3.bf16.msra.mxu1 %v1895_v37 }
 0x305   :  { %1707 = vmatprep.subr.bf16.mxu1 %v1898_v38 }
 0x306   :  { %1686 = vmatpush3.bf16.msra.mxu0 %v1897_v39 }
 0x308   :  { %1708 = vmatpush3.bf16.msra.mxu1 %v1899_v40 }
 0x309   :  { %1412 = vmatmul.mubr.bf16.vlgmr.msra.gmra.mrb[12].mxu0 %v2145_v3 }
 0x30b   :  { %1453 = vmatmul.mubr.bf16.vlgmr.msra.gmra.mrb[12].mxu1 %v777_v10 }
 0x3bc   :  { %v1643_v41 = vpop.f32.mrb[8].mxu0 }
 0x3bd   :  { %v1644_v43 = vpop.f32.mrb[9].mxu0 }
 0x3be   :  { %v1645_v22 = vadd.f32 %v1644_v43, %v1643_v41  ;;  %v1646_v44 = vpop.f32.mrb[10].mxu0  ;;  %v1665_v45 = vpop.f32.mrb[8].mxu1 }
 0x3bf   :  { %v1647_v24 = vpop.f32.mrb[11].mxu0  ;;  %v1666_v46 = vpop.f32.mrb[9].mxu1 }
 0x3c0   :  { %v1332_v47 = vadd.f32 %v1645_v22, %v1551_v42  ;;  %v1648_v48 = vadd.f32 %v1647_v24, %v1646_v44  ;;  %v1667_v49 = vadd.f32 %v1666_v46, %v1665_v45  ;;  %v1668_v50 = vpop.f32.mrb[10].mxu1 }
 0x3c1   :  { %v1669_v51 = vpop.f32.mrb[11].mxu1 }
 0x3c2   :  { %v1335_v52 = vadd.f32 %v1648_v48, %v1551_v42  ;;  %v1373_v53 = vadd.f32 %v1667_v49, %v1332_v47  ;;  %v1670_v54 = vadd.f32 %v1669_v51, %v1668_v50 }
 0x3c4   :  { %v1376_v55 = vadd.f32 %v1670_v54, %v1335_v52 }
 0x3dc   :  { %v1687_v56 = vpop.f32.mrb[12].mxu0 }
 0x3dd   :  { %v1688_v57 = vpop.f32.mrb[13].mxu0 }
 0x3de   :  { %v1689_v58 = vadd.f32 %v1688_v57, %v1687_v56  ;;  %v1690_v59 = vpop.f32.mrb[14].mxu0  ;;  %v1709_v60 = vpop.f32.mrb[12].mxu1 }
 0x3df   :  { %v1691_v61 = vpop.f32.mrb[15].mxu0  ;;  %v1710_v62 = vpop.f32.mrb[13].mxu1 }
 0x3e0   :  { %v1414_v63 = vadd.f32 %v1689_v58, %v1373_v53  ;;  %v1692_v0 = vadd.f32 %v1691_v61, %v1690_v59  ;;  %v1711_v1 = vadd.f32 %v1710_v62, %v1709_v60  ;;  %v1712_v2 = vpop.f32.mrb[14].mxu1 }
 0x3e1   :  { %v1713_v3 = vpop.f32.mrb[15].mxu1 }
 0x3e2   :  { %v1417_v4 = vadd.f32 %v1692_v0, %v1376_v55  ;;  %v1455_v5 = vadd.f32 %v1711_v1, %v1414_v63  ;;  %v1714_v6 = vadd.f32 %v1713_v3, %v1712_v2 }
 0x3e4   :  { %v1458_v7 = vadd.f32 %v1714_v6, %v1417_v4 }
 0x3e6   :  { %v1623_v8 = vpack.c.bf16 %v1458_v7, %v1455_v5 }
 0x3e8   :  { %1624 = vst [vmem:[%s2167_s8] sm:$0xff] %v1623_v8  }
 0x3e9   :  { %1475 = vsyncpa [#allocation3], 1 }
 0x3ea   :  { %1476 = vsyncpa [#allocation5], 1 }
 0x3eb   :  { %1477 = vsyncpa [#allocation8], 1 }

</bundles_post_ra>
